<compile_context>
chip_gen: v5e
topology: v5e:2x2
jax: 0.10.0
libtpu: 0.0.40
codegen_flags: <defaults>
</compile_context>

<pallas_src>
import jax
import jax.numpy as jnp
from jax.experimental import pallas as pl
from jax.experimental.pallas import tpu as pltpu

_DROP_P = 0.2
_LANE = 128


def _round_up(n: int, m: int) -> int:
    return ((n + m - 1) // m) * m


def _make_kernel(training: bool):
    def kernel(*refs):
        if training:
            (x_ref, m0_ref, m1_ref, m2_ref,
             w1_ref, b1_ref, w2_ref, b2_ref,
             w3_ref, b3_ref, w4_ref, b4_ref, o_ref) = refs
        else:
            (x_ref,
             w1_ref, b1_ref, w2_ref, b2_ref,
             w3_ref, b3_ref, w4_ref, b4_ref, o_ref) = refs

        def dense(w_ref, b_ref, h):
            # bf16 MXU operands, f32 accumulation; bias add stays f32.
            return jnp.dot(w_ref[...].astype(jnp.bfloat16),
                           h.astype(jnp.bfloat16),
                           preferred_element_type=jnp.float32) + b_ref[...]

        h = x_ref[...]                                   # (9, TB) f32
        if training:
            h = h * m0_ref[...]
        h = jnp.maximum(dense(w1_ref, b1_ref, h), 0.0)   # (32, TB)
        if training:
            h = h * m1_ref[...]
        h = jnp.maximum(dense(w2_ref, b2_ref, h), 0.0)   # (16, TB)
        if training:
            h = h * m2_ref[...]
        h = jnp.maximum(dense(w3_ref, b3_ref, h), 0.0)   # (8, TB)
        o_ref[...] = dense(w4_ref, b4_ref, h).astype(o_ref.dtype)  # (5, TB)

    return kernel


def neural_network_forward(x, params, *, training: bool = False, seed: int = 0,
                           tile_b: int = 4096):
    """x: (B, 9) float32. params: torch-layout weights (out,in), biases (out,1)."""
    B, F = x.shape
    assert F == 9, f"expected 9 input features, got {F}"

    # ---- tile sizing: lane dim = batch, multiple of 128, >=2 grid steps if
    #      the batch allows it (v7x dual-TC megacore). -------------------------
    b_min = _round_up(B, _LANE)
    if b_min > _LANE:
        cap = _round_up(pl.cdiv(b_min, 2), _LANE)
    else:
        cap = _LANE
    tile_b = max(_LANE, min(_round_up(tile_b, _LANE), cap))
    b_pad = _round_up(B, tile_b)
    grid = (b_pad // tile_b,)

    # Feature-major: (9, B_pad) input, (5, B_pad) output -> lane-dense blocks.
    x_t = jnp.pad(x, ((0, b_pad - B), (0, 0))).T

    w1, b1, w2, b2, w3, b3, w4, b4 = (
        params["w1"], params["b1"], params["w2"], params["b2"],
        params["w3"], params["b3"], params["w4"], params["b4"],
    )

    def col_spec(rows):
        # batch-tiled, lane-dense block (rows == full feature dim)
        return pl.BlockSpec((rows, tile_b), lambda i: (0, i))

    def full_spec(arr):
        # weights/biases: full-array blocks, constant index map -> VMEM-resident
        return pl.BlockSpec(arr.shape, lambda i: (0, 0))

    args = [x_t]
    in_specs = [col_spec(9)]

    if training:
        keep = 1.0 - _DROP_P
        k0, k1, k2 = jax.random.split(jax.random.PRNGKey(seed), 3)
        # Pre-scaled inverted-dropout masks, generated lane-dense (feature-major).
        # TODO(synk): cannot bit-match torch's dropout RNG stream.
        for k, rows in ((k0, 9), (k1, 32), (k2, 16)):
            m = jax.random.bernoulli(k, keep, (rows, b_pad)).astype(jnp.float32)
            args.append(m / keep)
            in_specs.append(col_spec(rows))

    weight_args = [w1, b1, w2, b2, w3, b3, w4, b4]
    args += weight_args
    in_specs += [full_spec(a) for a in weight_args]

    out_t = pl.pallas_call(
        _make_kernel(training),
        out_shape=jax.ShapeDtypeStruct((5, b_pad), jnp.float32),
        grid_spec=pltpu.PrefetchScalarGridSpec(
            num_scalar_prefetch=0,
            grid=grid,
            in_specs=in_specs,
            out_specs=pl.BlockSpec((5, tile_b), lambda i: (0, i)),
        ),
        compiler_params=pltpu.CompilerParams(
            dimension_semantics=("parallel",),
            vmem_limit_bytes=32 * 1024 * 1024,
        ),
    )(*args)

    return out_t.T[:B]


def init_params():
    """Deterministic init mimicking torch.nn.Linear (weights (out,in), bias (out,1))."""
    key = jax.random.PRNGKey(42)
    dims = [(9, 32), (32, 16), (16, 8), (8, 5)]
    params = {}
    for i, (fan_in, fan_out) in enumerate(dims, start=1):
        key, kw, kb = jax.random.split(key, 3)
        bound = 1.0 / jnp.sqrt(fan_in)
        params[f"w{i}"] = jax.random.uniform(
            kw, (fan_out, fan_in), jnp.float32, -bound, bound)
        params[f"b{i}"] = jax.random.uniform(
            kb, (fan_out, 1), jnp.float32, -bound, bound)
    return params


def reference_forward(x, params):
    """Eval-mode reference (dropout = identity), same bf16-matmul numerics."""
    def dense(h, w, b):
        return jnp.dot(h.astype(jnp.bfloat16), w.T.astype(jnp.bfloat16),
                       preferred_element_type=jnp.float32) + b[:, 0]

    h = jnp.maximum(dense(x, params["w1"], params["b1"]), 0.0)
    h = jnp.maximum(dense(h, params["w2"], params["b2"]), 0.0)
    h = jnp.maximum(dense(h, params["w3"], params["b3"]), 0.0)
    return dense(h, params["w4"], params["b4"])


if __name__ == "__main__":
    params = init_params()
    key = jax.random.PRNGKey(0)
    k1, k2 = jax.random.split(key)

    # --- eval mode (matches torch module in .eval()): small batch, 1 tile ---
    B = 8
    x = jax.random.normal(k1, (B, 9), dtype=jnp.float32)
    out = jax.block_until_ready(neural_network_forward(x, params))
    ref = reference_forward(x, params)
    assert out.shape == (B, 5), out.shape
    assert jnp.allclose(out, ref, atol=1e-4, rtol=1e-4), "eval mismatch vs reference"

    # --- eval mode, multi-step grid with ragged tail (B=300 -> 2 grid steps) ---
    B2 = 300
    x2 = jax.random.normal(k2, (B2, 9), dtype=jnp.float32)
    out2 = jax.block_until_ready(neural_network_forward(x2, params))
    ref2 = reference_forward(x2, params)
    assert out2.shape == (B2, 5), out2.shape
    assert jnp.allclose(out2, ref2, atol=1e-4, rtol=1e-4), "tiled eval mismatch"

    # --- training mode (dropout masks applied in-kernel): sanity only ---
    out_tr = jax.block_until_ready(
        neural_network_forward(x2, params, training=True, seed=123))
    assert out_tr.shape == (B2, 5), out_tr.shape
    assert bool(jnp.all(jnp.isfinite(out_tr))), "non-finite training output"

    print("KERNEL_OK")
</pallas_src>

<mosaic_0001>
module attributes {stable_mosaic.version = 11 : i64} {
  func.func @kernel(%arg0: i32, %arg1: memref<9x128xf32, #tpu.memory_space<vmem>>, %arg2: memref<32x9xf32, #tpu.memory_space<vmem>>, %arg3: memref<32x1xf32, #tpu.memory_space<vmem>>, %arg4: memref<16x32xf32, #tpu.memory_space<vmem>>, %arg5: memref<16x1xf32, #tpu.memory_space<vmem>>, %arg6: memref<8x16xf32, #tpu.memory_space<vmem>>, %arg7: memref<8x1xf32, #tpu.memory_space<vmem>>, %arg8: memref<5x8xf32, #tpu.memory_space<vmem>>, %arg9: memref<5x1xf32, #tpu.memory_space<vmem>>, %arg10: memref<5x128xf32, #tpu.memory_space<vmem>>) attributes {dimension_semantics = [#tpu.dimension_semantics<parallel>], iteration_bounds = array<i64: 1>, scalar_prefetch = 0 : i64, scratch_operands = 0 : i64, tpu.core_type = #tpu.core_type<tc>, window_params = [{transform_indices = @transform_0, window_bounds = array<i64: 9, 128>}, {pipeline_mode = #tpu.pipeline_mode<synchronous>, transform_indices = @transform_1, window_bounds = array<i64: 32, 9>}, {pipeline_mode = #tpu.pipeline_mode<synchronous>, transform_indices = @transform_2, window_bounds = array<i64: 32, 1>}, {pipeline_mode = #tpu.pipeline_mode<synchronous>, transform_indices = @transform_3, window_bounds = array<i64: 16, 32>}, {pipeline_mode = #tpu.pipeline_mode<synchronous>, transform_indices = @transform_4, window_bounds = array<i64: 16, 1>}, {pipeline_mode = #tpu.pipeline_mode<synchronous>, transform_indices = @transform_5, window_bounds = array<i64: 8, 16>}, {pipeline_mode = #tpu.pipeline_mode<synchronous>, transform_indices = @transform_6, window_bounds = array<i64: 8, 1>}, {pipeline_mode = #tpu.pipeline_mode<synchronous>, transform_indices = @transform_7, window_bounds = array<i64: 5, 8>}, {pipeline_mode = #tpu.pipeline_mode<synchronous>, transform_indices = @transform_8, window_bounds = array<i64: 5, 1>}, {transform_indices = @transform_9, window_bounds = array<i64: 5, 128>}]} {
    %c0 = arith.constant 0 : index
    %c0_0 = arith.constant 0 : index
    %0 = vector.load %arg1[%c0, %c0_0] : memref<9x128xf32, #tpu.memory_space<vmem>>, vector<9x128xf32>
    %c0_1 = arith.constant 0 : index
    %c0_2 = arith.constant 0 : index
    %1 = vector.load %arg2[%c0_1, %c0_2] : memref<32x9xf32, #tpu.memory_space<vmem>>, vector<32x9xf32>
    %2 = arith.truncf %1 : vector<32x9xf32> to vector<32x9xbf16>
    %3 = arith.truncf %0 : vector<9x128xf32> to vector<9x128xbf16>
    %cst = arith.constant dense<0.000000e+00> : vector<32x128xf32>
    %4 = tpu.matmul %2, %3, %cst {dimension_numbers = #tpu.dot_dimension_numbers<[1], [0], [0], [1], [0, 0, 1, 1], [], []>} : vector<32x9xbf16>, vector<9x128xbf16>, vector<32x128xf32> -> vector<32x128xf32>
    %c0_3 = arith.constant 0 : index
    %c0_4 = arith.constant 0 : index
    %5 = vector.load %arg3[%c0_3, %c0_4] : memref<32x1xf32, #tpu.memory_space<vmem>>, vector<32x1xf32>
    %6 = vector.broadcast %5 : vector<32x1xf32> to vector<32x128xf32>
    %7 = arith.addf %4, %6 : vector<32x128xf32>
    %cst_5 = arith.constant 0.000000e+00 : f32
    %8 = vector.broadcast %cst_5 : f32 to vector<32x128xf32>
    %9 = arith.maximumf %7, %8 : vector<32x128xf32>
    %c0_6 = arith.constant 0 : index
    %c0_7 = arith.constant 0 : index
    %10 = vector.load %arg4[%c0_6, %c0_7] : memref<16x32xf32, #tpu.memory_space<vmem>>, vector<16x32xf32>
    %11 = arith.truncf %10 : vector<16x32xf32> to vector<16x32xbf16>
    %12 = arith.truncf %9 : vector<32x128xf32> to vector<32x128xbf16>
    %cst_8 = arith.constant dense<0.000000e+00> : vector<16x128xf32>
    %13 = tpu.matmul %11, %12, %cst_8 {dimension_numbers = #tpu.dot_dimension_numbers<[1], [0], [0], [1], [0, 0, 1, 1], [], []>} : vector<16x32xbf16>, vector<32x128xbf16>, vector<16x128xf32> -> vector<16x128xf32>
    %c0_9 = arith.constant 0 : index
    %c0_10 = arith.constant 0 : index
    %14 = vector.load %arg5[%c0_9, %c0_10] : memref<16x1xf32, #tpu.memory_space<vmem>>, vector<16x1xf32>
    %15 = vector.broadcast %14 : vector<16x1xf32> to vector<16x128xf32>
    %16 = arith.addf %13, %15 : vector<16x128xf32>
    %cst_11 = arith.constant 0.000000e+00 : f32
    %17 = vector.broadcast %cst_11 : f32 to vector<16x128xf32>
    %18 = arith.maximumf %16, %17 : vector<16x128xf32>
    %c0_12 = arith.constant 0 : index
    %c0_13 = arith.constant 0 : index
    %19 = vector.load %arg6[%c0_12, %c0_13] : memref<8x16xf32, #tpu.memory_space<vmem>>, vector<8x16xf32>
    %20 = arith.truncf %19 : vector<8x16xf32> to vector<8x16xbf16>
    %21 = arith.truncf %18 : vector<16x128xf32> to vector<16x128xbf16>
    %cst_14 = arith.constant dense<0.000000e+00> : vector<8x128xf32>
    %22 = tpu.matmul %20, %21, %cst_14 {dimension_numbers = #tpu.dot_dimension_numbers<[1], [0], [0], [1], [0, 0, 1, 1], [], []>} : vector<8x16xbf16>, vector<16x128xbf16>, vector<8x128xf32> -> vector<8x128xf32>
    %c0_15 = arith.constant 0 : index
    %c0_16 = arith.constant 0 : index
    %23 = vector.load %arg7[%c0_15, %c0_16] : memref<8x1xf32, #tpu.memory_space<vmem>>, vector<8x1xf32>
    %24 = vector.broadcast %23 : vector<8x1xf32> to vector<8x128xf32>
    %25 = arith.addf %22, %24 : vector<8x128xf32>
    %cst_17 = arith.constant 0.000000e+00 : f32
    %26 = vector.broadcast %cst_17 : f32 to vector<8x128xf32>
    %27 = arith.maximumf %25, %26 : vector<8x128xf32>
    %c0_18 = arith.constant 0 : index
    %c0_19 = arith.constant 0 : index
    %28 = vector.load %arg8[%c0_18, %c0_19] : memref<5x8xf32, #tpu.memory_space<vmem>>, vector<5x8xf32>
    %29 = arith.truncf %28 : vector<5x8xf32> to vector<5x8xbf16>
    %30 = arith.truncf %27 : vector<8x128xf32> to vector<8x128xbf16>
    %cst_20 = arith.constant dense<0.000000e+00> : vector<5x128xf32>
    %31 = tpu.matmul %29, %30, %cst_20 {dimension_numbers = #tpu.dot_dimension_numbers<[1], [0], [0], [1], [0, 0, 1, 1], [], []>} : vector<5x8xbf16>, vector<8x128xbf16>, vector<5x128xf32> -> vector<5x128xf32>
    %c0_21 = arith.constant 0 : index
    %c0_22 = arith.constant 0 : index
    %32 = vector.load %arg9[%c0_21, %c0_22] : memref<5x1xf32, #tpu.memory_space<vmem>>, vector<5x1xf32>
    %33 = vector.broadcast %32 : vector<5x1xf32> to vector<5x128xf32>
    %34 = arith.addf %31, %33 : vector<5x128xf32>
    %c0_23 = arith.constant 0 : index
    %c0_24 = arith.constant 0 : index
    %35 = vector.load %arg10[%c0_23, %c0_24] : memref<5x128xf32, #tpu.memory_space<vmem>>, vector<5x128xf32>
    tpu.vector_store %arg10[%c0_23, %c0_24], %34 {strides = array<i32>} : memref<5x128xf32, #tpu.memory_space<vmem>>, vector<5x128xf32>,
    return
  }
  func.func @transform_0(%arg0: i32) -> (i32, i32) {
    %c0_i32 = arith.constant 0 : i32
    %c0_i32_0 = arith.constant 0 : i32
    return %c0_i32, %arg0 : i32, i32
  }
  func.func @transform_1(%arg0: i32) -> (i32, i32) {
    %c0_i32 = arith.constant 0 : i32
    %c0_i32_0 = arith.constant 0 : i32
    %c0_i32_1 = arith.constant 0 : i32
    return %c0_i32, %c0_i32_0 : i32, i32
  }
  func.func @transform_2(%arg0: i32) -> (i32, i32) {
    %c0_i32 = arith.constant 0 : i32
    %c0_i32_0 = arith.constant 0 : i32
    %c0_i32_1 = arith.constant 0 : i32
    return %c0_i32, %c0_i32_0 : i32, i32
  }
  func.func @transform_3(%arg0: i32) -> (i32, i32) {
    %c0_i32 = arith.constant 0 : i32
    %c0_i32_0 = arith.constant 0 : i32
    %c0_i32_1 = arith.constant 0 : i32
    return %c0_i32, %c0_i32_0 : i32, i32
  }
  func.func @transform_4(%arg0: i32) -> (i32, i32) {
    %c0_i32 = arith.constant 0 : i32
    %c0_i32_0 = arith.constant 0 : i32
    %c0_i32_1 = arith.constant 0 : i32
    return %c0_i32, %c0_i32_0 : i32, i32
  }
  func.func @transform_5(%arg0: i32) -> (i32, i32) {
    %c0_i32 = arith.constant 0 : i32
    %c0_i32_0 = arith.constant 0 : i32
    %c0_i32_1 = arith.constant 0 : i32
    return %c0_i32, %c0_i32_0 : i32, i32
  }
  func.func @transform_6(%arg0: i32) -> (i32, i32) {
    %c0_i32 = arith.constant 0 : i32
    %c0_i32_0 = arith.constant 0 : i32
    %c0_i32_1 = arith.constant 0 : i32
    return %c0_i32, %c0_i32_0 : i32, i32
  }
  func.func @transform_7(%arg0: i32) -> (i32, i32) {
    %c0_i32 = arith.constant 0 : i32
    %c0_i32_0 = arith.constant 0 : i32
    %c0_i32_1 = arith.constant 0 : i32
    return %c0_i32, %c0_i32_0 : i32, i32
  }
  func.func @transform_8(%arg0: i32) -> (i32, i32) {
    %c0_i32 = arith.constant 0 : i32
    %c0_i32_0 = arith.constant 0 : i32
    %c0_i32_1 = arith.constant 0 : i32
    return %c0_i32, %c0_i32_0 : i32, i32
  }
  func.func @transform_9(%arg0: i32) -> (i32, i32) {
    %c0_i32 = arith.constant 0 : i32
    %c0_i32_0 = arith.constant 0 : i32
    return %c0_i32, %arg0 : i32, i32
  }
}

</mosaic_0001>

<bundles_post_ra>
// kernel: tpu_custom_call.1
= control target key start
LH: loop header
LB: loop body
LE: loop exit
PB: predicated region body
PF: predicated region fallthrough
CT: control target
= control target key end

     0   :  { %vm74_vm0 = vcmask 1043456   ;;  %vm75_vm1 = vcmask 1044480   ;;  %v251_v3 = vmov 65535   ;;  %v252_v9 = vmov 0   ;;  %s363_s0 = inlined_call_operand.vmem [shape: f32[9,128], index: 0, kind: input, shape index: {}]   ;;  %s364_s1 = inlined_call_operand.vmem [shape: f32[32,9], index: 1, kind: input, shape index: {}]   ;;  %s365_s2 = inlined_call_operand.vmem [shape: f32[32,1], index: 2, kind: input, shape index: {}]   ;;  %s366_s3 = inlined_call_operand.vmem [shape: f32[16,32], index: 3, kind: input, shape index: {}]   ;;  %s367_s4 = inlined_call_operand.vmem [shape: f32[16,1], index: 4, kind: input, shape index: {}]   ;;  %s368_s5 = inlined_call_operand.vmem [shape: f32[8,16], index: 5, kind: input, shape index: {}]   ;;  %s369_s6 = inlined_call_operand.vmem [shape: f32[8,1], index: 6, kind: input, shape index: {}]   ;;  %s370_s7 = inlined_call_operand.vmem [shape: f32[5,8], index: 7, kind: input, shape index: {}]   ;;  %s371_s8 = inlined_call_operand.vmem [shape: f32[5,1], index: 8, kind: input, shape index: {}]   ;;  %s372_s9 = inlined_call_operand.hbm [shape: f32[5,128], index: 9, kind: output, shape index: {}]  }
   0x1   :  { %v34_v0 = vld [vmem:[%s363_s0] sm:$0xff]  ;;  %v35_v1 = vld [vmem:[%s363_s0 + $0x8] sm:$0x1]  ;;  %v76_v4 = vsel %vm74_vm0, 4294967295, %v251_v3  ;;  %v45_v7 = vld [vmem:[%s365_s2 + $0x10] sm:$0xff]  ;;  %223 = vset.pattern.permute.xlu1 %v252_v9  ;;  %222 = vset.pattern.permute.xlu0 %v252_v9 }
   0x2   :  { %v42_v2 = vpack.c.bf16 %v35_v1, %v34_v0  ;;  %v36_v5 = vld [vmem:[%s364_s1] sm:$0xff]  ;;  %v37_v6 = vld [vmem:[%s364_s1 + $0x8] sm:$0xff]  ;;  %v77_v8 = vsel %vm75_vm1, %v76_v4, 0  ;;  %59 = vperm.xlu0 %222, %v45_v7   ;;  %224 = vset.pattern.permute.xlu2 %v252_v9 }
   0x3   :  { %v43_v10 = vld [vmem:[%s365_s2] sm:$0xff]  ;;  %v40_v12 = vpack.c.bf16 %v37_v6, %v36_v5 }
   0x4   :  { %v79_v11 = vand.u32 %v77_v8, %v42_v2  ;;  %49 = vperm.xlu1 %223, %v43_v10  }
   0x5   :  { %14 = vsyncpa [#allocation3], 0  ;;  %vm67_vm2 = vcmask 72704   ;;  %v46_v13 = vld [vmem:[%s365_s2 + $0x18] sm:$0xff]  ;;  %v44_v14 = vld [vmem:[%s365_s2 + $0x8] sm:$0xff]  ;;  %vm121_vm3 = vcmask 261120  }
   0x6   :  { %88 = vmatpush.bf16.msra.mxu0 %v79_v11  ;;  %v144_v15 = vld [vmem:[%s369_s6] sm:$0xff]  ;;  %v38_v17 = vld [vmem:[%s364_s1 + $0x10] sm:$0xff]  ;;  %v39_v18 = vld [vmem:[%s364_s1 + $0x18] sm:$0xff]  ;;  %vm150_vm4 = vcmask 130048   ;;  %vm177_vm5 = vcmask 64512   ;;  %s205_s19 = sshll.u32 %s372_s9, 4  ;;  %s206_s19 = int_to_ptr.hbm [resolvable:$true] %s205_s19 }
   0x7   :  { %v171_v16 = vld [vmem:[%s371_s8] sm:$0x1f]  ;;  %v41_v19 = vpack.c.bf16 %v39_v18, %v38_v17  ;;  %v110_v24 = vld [vmem:[%s367_s4 + $0x8] sm:$0xff] }
   0x8   :  { %v109_v21 = vld [vmem:[%s367_s4] sm:$0xff]  ;;  %v105_v40 = vld [vmem:[%s366_s3 + $0x8] sm:$0xff] }
   0x9   :  { %214 = vmatmul.msk.bf16.vlgmr.msra.gmra.mxu0 %vm67_vm2, %v40_v12  ;;  %113 = vperm.xlu2 %224, %v109_v21   ;;  %v104_v39 = vld [vmem:[%s366_s3] sm:$0xff] }
   0xa   :  { %64 = vperm.xlu0 %222, %v46_v13   ;;  %v106_v42 = vpack.c.bf16 %v105_v40, %v104_v39  ;;  %v141_v51 = vld [vmem:[%s368_s5] sm:$0xff]  ;;  %s253_s5 = smov [#allocation2]  }
   0xb   :  { %v142_v53 = vpack.c.bf16 %v141_v51, %v141_v51  ;;  %v168_v58 = vld [vmem:[%s370_s7] sm:$0x1f]  ;;  %s203_s17 = sshll.u32 %s253_s5, 4  ;;  %s204_s17 = int_to_ptr.vmem [resolvable:$true] %s203_s17 }
   0xc   :  { %54 = vperm.xlu1 %223, %v44_v14   ;;  %v169_v61 = vpack.c.bf16 %v168_v58, %v168_v58 }
  0x11   :  { %118 = vperm.xlu2 %224, %v110_v24  }
  0x12   :  { %147 = vperm.xlu0 %222, %v144_v15  }
  0x14   :  { %174 = vperm.xlu1 %223, %v171_v16  }
  0x19   :  { %215 = vmatmul.msk.bf16.gmra.mxu0 %vm67_vm2, %v41_v19 }
  0x63   :  { %v114_v43 = vpop.permute.xlu2 %113 }
  0x6b   :  { %v119_v46 = vpop.permute.xlu2 %118 }
  0x74   :  { %v60_v25 = vpop.permute.xlu0 %59 }
  0x76   :  { %v50_v23 = vpop.permute.xlu1 %49 }
  0x7c   :  { %v65_v29 = vpop.permute.xlu0 %64 }
  0x7e   :  { %v55_v27 = vpop.permute.xlu1 %54 }
  0x84   :  { %v148_v54 = vpop.permute.xlu0 %147 }
  0x86   :  { %v90_v20 = vpop.f32.mrf.mxu0  ;;  %v175_v63 = vpop.permute.xlu1 %174 }
  0x87   :  { %v91_v33 = vadd.f32 %v90_v20, %v50_v23 }
  0x89   :  { %v100_v38 = vmax.f32 %v91_v33, 0.0 }
  0x8e   :  { %v92_v22 = vpop.f32.mrf.mxu0 }
  0x8f   :  { %v93_v31 = vadd.f32 %v92_v22, %v55_v27 }
  0x91   :  { %v101_v36 = vmax.f32 %v93_v31, 0.0 }
  0x93   :  { %v107_v41 = vpack.c.bf16 %v101_v36, %v100_v38 }
  0x96   :  { %v95_v26 = vpop.f32.mrf.mxu0 }
  0x97   :  { %v96_v28 = vadd.f32 %v95_v26, %v60_v25 }
  0x99   :  { %v102_v34 = vmax.f32 %v96_v28, 0.0 }
  0x9e   :  { %v97_v30 = vpop.f32.mrf.mxu0 }
  0x9f   :  { %v98_v32 = vadd.f32 %v97_v30, %v65_v29 }
  0xa1   :  { %v103_v35 = vmax.f32 %v98_v32, 0.0 }
  0xa3   :  { %v108_v37 = vpack.c.bf16 %v103_v35, %v102_v34 }
  0xa5   :  { %131 = vmatpush.bf16.msra.mxu1 %v108_v37 }
  0xa9   :  { %132 = vmatpush.bf16.msra.mxu1 %v107_v41 }
  0xac   :  { %216 = vmatmul.msk.bf16.vlgmr.msra.gmra.mxu1 %vm121_vm3, %v106_v42 }
 0x129   :  { %v134_v44 = vpop.f32.mrf.mxu1 }
 0x12a   :  { %v135_v45 = vadd.f32 %v134_v44, %v114_v43 }
 0x12c   :  { %v139_v49 = vmax.f32 %v135_v45, 0.0 }
 0x131   :  { %v136_v47 = vpop.f32.mrf.mxu1 }
 0x132   :  { %v137_v48 = vadd.f32 %v136_v47, %v119_v46 }
 0x134   :  { %v140_v50 = vmax.f32 %v137_v48, 0.0 }
 0x136   :  { %v143_v52 = vpack.c.bf16 %v140_v50, %v139_v49 }
 0x138   :  { %161 = vmatpush.bf16.msra.mxu2 %v143_v52 }
 0x13b   :  { %217 = vmatmul.msk.bf16.vlgmr.msra.gmra.mxu2 %vm150_vm4, %v142_v53 }
 0x1be   :  { %v163_v55 = vpop.f32.mrf.mxu2 }
 0x1bf   :  { %v164_v56 = vadd.f32 %v163_v55, %v148_v54 }
 0x1c1   :  { %v167_v57 = vmax.f32 %v164_v56, 0.0 }
 0x1c3   :  { %v170_v59 = vpack.c.bf16 %v167_v57, %v167_v57 }
 0x1c5   :  { %v182_v60 = vsel %vm74_vm0, %v170_v59, 0 }
 0x1c6   :  { %v165_v62 = vpop.f32.mrf.mxu2  ;;  %191 = vmatpush.bf16.msra.mxu3 %v182_v60 }
 0x1c9   :  { %218 = vmatmul.msk.bf16.vlgmr.msra.gmra.mxu3 %vm177_vm5, %v169_v61 }
 0x24c   :  { %v193_v0 = vpop.f32.mrf.mxu3 }
 0x24d   :  { %v194_v1 = vadd.f32 %v193_v0, %v175_v63 }
 0x24f   :  { %197 = vst [vmem:[#allocation2] sm:$0x1f] %v194_v1 }
 0x250   :  { %208 = dma.vmem_to_hbm [thread:$0]  %s204_s17, 128, %s206_s19, [#allocation3]  }
 0x254   :  { %v195_v2 = vpop.f32.mrf.mxu3 }
 0x255   :  { %249 = dma.done.wait [#allocation3], 128  }
 0x256   :  { %250 = vsyncadd [#allocation3], 4294967168 }
 0x257   :  { %213 = vsyncpa [#allocation3], 1 }

</bundles_post_ra>
